<compile_context>
chip_gen: v7x
topology: tpu7x:2x2x1
jax: 0.10.0
libtpu: 0.0.40
codegen_flags: <defaults>
</compile_context>

<pallas_src>
import numpy as np
import jax
import jax.numpy as jnp
from jax.experimental import pallas as pl
from jax.experimental.pallas import tpu as pltpu


# ----------------------------------------------------------------------------
# Glue: build the fused sampling/readout weight matrix (parameter-only math)
# ----------------------------------------------------------------------------
def bilinear_weight_matrix(g, H, W):
    """Dense bilinear grid-sample weights (align_corners=False, zeros padding).

    g: (D, 2) with g[:,0]=x (indexes W, the last dim), g[:,1]=y (indexes H).
    Returns (D, H*W) float32 such that sample[d] = sum_p B[d, p] * img.flatten()[p].
    """
    g = np.asarray(g, np.float32)
    gx, gy = g[:, 0], g[:, 1]
    ix = ((gx + 1.0) * W - 1.0) / 2.0
    iy = ((gy + 1.0) * H - 1.0) / 2.0
    ix0 = np.floor(ix).astype(np.int64)
    iy0 = np.floor(iy).astype(np.int64)
    wx1 = ix - ix0
    wx0 = 1.0 - wx1
    wy1 = iy - iy0
    wy0 = 1.0 - wy1
    D = g.shape[0]
    B = np.zeros((D, H * W), np.float32)
    for cy, wy in ((iy0, wy0), (iy0 + 1, wy1)):
        for cx, wx in ((ix0, wx0), (ix0 + 1, wx1)):
            inb = (cy >= 0) & (cy < H) & (cx >= 0) & (cx < W)
            wgt = np.where(inb, wy * wx, 0.0).astype(np.float32)
            idx = np.clip(cy, 0, H - 1) * W + np.clip(cx, 0, W - 1)
            B[np.arange(D), idx] += wgt
    return B


def avg_pool_matrix(H, W):
    """Matrix form of AvgPool2d(kernel=2, stride=2, no padding): (Ho*Wo, H*W)."""
    Ho, Wo = H // 2, W // 2
    M = np.zeros((Ho * Wo, H * W), np.float32)
    for i in range(Ho):
        for j in range(Wo):
            for di in range(2):
                for dj in range(2):
                    M[i * Wo + j, (2 * i + di) * W + (2 * j + dj)] = 0.25
    return M


def build_effective_weights(g_np, w, h, c, pool_steps, feat_np):
    """Fuse pooling, bilinear sampling, level sum and feature readout.

    Returns W_eff of shape (c * P, D) with P = w*h such that
        y[nt, d] = sum_{c,p} z[nt, c, p] * W_eff[c*P + p, d].
    """
    m = pool_steps + 1
    P = w * h
    levels = []
    compose = np.eye(P, dtype=np.float32)  # original grid -> current level (linear)
    H, W = w, h
    for l in range(m):
        if l > 0:
            compose = avg_pool_matrix(H, W) @ compose
            H, W = H // 2, W // 2
        B = bilinear_weight_matrix(g_np, H, W)     # (D, H*W)
        levels.append((B @ compose).T)             # (P, D) over the original grid
    w_all = np.stack(levels, axis=0)               # (m, P, D)
    # feat_np: (m, c, D) ;  W_eff[c, p, d] = sum_l w_all[l, p, d] * feat[l, c, d]
    w_eff = np.einsum('lpd,lcd->cpd', w_all, feat_np.astype(np.float32))
    return w_eff.reshape(c * P, w_all.shape[-1])   # (c*P, D)


def _round_up(x, m):
    return -(-x // m) * m


def _choose_block(NT, requested):
    """Block size along NT: multiple of 8, and >=2 grid steps when NT allows."""
    tb = min(requested, _round_up(NT, 8))
    if NT > 8 and _round_up(NT, tb) // tb < 2:
        tb = max(8, _round_up(-(-NT // 2), 8))
    return tb


# ----------------------------------------------------------------------------
# Pallas kernel: one streaming MXU matmul per NT-tile + bias add
# ----------------------------------------------------------------------------
def readout_kernel(z_ref, w_ref, bias_ref, o_ref):
    # z_ref   : (TB, K)   bf16 activations tile, K = C * W * H
    # w_ref   : (K, Dp)   bf16 fused (pool + bilinear + feature) weights, lane-padded
    # bias_ref: (1, Dp)   f32
    # o_ref   : (TB, Dp)  f32
    acc = jnp.dot(z_ref[...], w_ref[...], preferred_element_type=jnp.float32)
    o_ref[...] = acc + bias_ref[...]


def pooled_readout(z_flat, w_eff, bias2d, *, block_nt):
    NT, K = z_flat.shape
    _, Dp = w_eff.shape

    tb = _choose_block(NT, block_nt)
    NT_pad = _round_up(NT, tb)
    if NT_pad > NT:
        z_flat = jnp.pad(z_flat, ((0, NT_pad - NT), (0, 0)))

    out = pl.pallas_call(
        readout_kernel,
        out_shape=jax.ShapeDtypeStruct((NT_pad, Dp), jnp.float32),
        grid_spec=pltpu.PrefetchScalarGridSpec(
            num_scalar_prefetch=0,
            grid=(NT_pad // tb,),
            in_specs=[
                pl.BlockSpec((tb, K), lambda i: (i, 0)),    # z: streamed per tile
                pl.BlockSpec((K, Dp), lambda i: (0, 0)),    # W_eff: resident
                pl.BlockSpec((1, Dp), lambda i: (0, 0)),    # bias: resident
            ],
            out_specs=pl.BlockSpec((tb, Dp), lambda i: (i, 0)),
        ),
        compiler_params=pltpu.CompilerParams(
            dimension_semantics=("parallel",)),
    )(z_flat, w_eff, bias2d)
    return out[:NT]


# ----------------------------------------------------------------------------
# Forward wrapper (glue: reshapes / parameter preprocessing)
# ----------------------------------------------------------------------------
def spatial_transformer_pooled3d(x, grid_param, features, bias, *,
                                 pool_steps=1, block_nt=256):
    # layout: PyTorch input is (N, C, T, W, H).  Glue reshapes it to z_flat of shape
    # (NT, C*P) with NT = N*T and P = W*H (row-major spatial flatten); the kernel
    # tiles NT and performs one (TB, C*P) @ (C*P, Dp) matmul per tile.
    N, c, t, w, h = x.shape
    m = pool_steps + 1
    D = grid_param.shape[1]
    P = w * h
    Dp = max(128, _round_up(D, 128))   # lane-dense output / weight padding

    # Parameter preprocessing on the host (pure index math, tiny).
    g = np.asarray(jnp.clip(grid_param, -1.0, 1.0)).reshape(D, 2)  # grid.data.clamp(-1,1)
    feat_np = np.asarray(features).reshape(m, c, D)
    w_eff = build_effective_weights(g, w, h, c, pool_steps, feat_np)   # (c*P, D) f32

    w_eff_pad = np.zeros((c * P, Dp), np.float32)
    w_eff_pad[:, :D] = w_eff
    bias_pad = np.zeros((1, Dp), np.float32)
    bias_pad[0, :D] = np.asarray(bias, np.float32)

    w_eff_bf16 = jnp.asarray(w_eff_pad, jnp.bfloat16)
    bias2d = jnp.asarray(bias_pad, jnp.float32)

    # bf16 streaming of the activations; f32 accumulation inside the MXU.
    z_flat = jnp.transpose(x, (0, 2, 1, 3, 4)).reshape(N * t, c * P).astype(jnp.bfloat16)

    y = pooled_readout(z_flat, w_eff_bf16, bias2d, block_nt=block_nt)  # (NT, Dp) f32
    return y[:, :D].reshape(N, t, D)


# ----------------------------------------------------------------------------
# Pure-JAX reference (explicit avg-pool + bilinear sampling, mirrors PyTorch path)
# ----------------------------------------------------------------------------
def ref_forward(x, grid_param, features, bias, pool_steps):
    N, c, t, w, h = x.shape
    D = grid_param.shape[1]
    m = pool_steps + 1
    g = np.asarray(jnp.clip(grid_param, -1.0, 1.0)).reshape(D, 2)
    z = jnp.transpose(x, (0, 2, 1, 3, 4)).reshape(N * t, c, w, h)
    pools = []
    zl = z
    for l in range(m):
        if l > 0:
            H, W = zl.shape[-2], zl.shape[-1]
            Ho, Wo = H // 2, W // 2
            zl = zl[..., :Ho * 2, :Wo * 2].reshape(N * t, c, Ho, 2, Wo, 2).mean(axis=(3, 5))
        H, W = zl.shape[-2], zl.shape[-1]
        B = jnp.asarray(bilinear_weight_matrix(g, H, W))           # (D, H*W)
        pools.append(jnp.einsum('ncp,dp->ncd', zl.reshape(N * t, c, H * W), B))
    y = jnp.concatenate(pools, axis=1)                             # (NT, m*c, D)
    feat = features.reshape(1, m * c, D)
    y = (y * feat).sum(axis=1).reshape(N, t, D)
    return y + bias


# ----------------------------------------------------------------------------
if __name__ == "__main__":
    # in_shape = (c, t, w, h) = (4, 8, 16, 16), outdims = 8, pool_steps = 1
    N, c, t, w, h = 2, 4, 8, 16, 16
    outdims = 8
    pool_steps = 1
    init_range = 0.05

    key = jax.random.PRNGKey(0)
    kx, kg = jax.random.split(key)
    x = jax.random.normal(kx, (N, c, t, w, h), jnp.float32)

    # Deterministic parameter init matching SpatialTransformerPooled3d.initialize():
    grid_param = jax.random.uniform(kg, (1, outdims, 1, 2), jnp.float32,
                                    -init_range, init_range)              # uniform(±init_range)
    features = jnp.full((1, c * (pool_steps + 1), 1, outdims), 1.0 / c,
                        jnp.float32)                                      # fill(1/c)
    bias = jnp.zeros((outdims,), jnp.float32)                             # fill(0)

    y = spatial_transformer_pooled3d(x, grid_param, features, bias,
                                     pool_steps=pool_steps, block_nt=256)
    y = jax.block_until_ready(y)
    assert y.shape == (N, t, outdims), y.shape

    y_ref = ref_forward(x, grid_param, features, bias, pool_steps)
    np.testing.assert_allclose(np.asarray(y), np.asarray(y_ref),
                               rtol=2e-2, atol=2e-2)

    print("KERNEL_OK")
</pallas_src>

<mosaic_0001>
module attributes {stable_mosaic.version = 11 : i64} {
  func.func @readout_kernel(%arg0: i32, %arg1: memref<8x1024xbf16, #tpu.memory_space<vmem>>, %arg2: memref<1024x128xbf16, #tpu.memory_space<vmem>>, %arg3: memref<1x128xf32, #tpu.memory_space<vmem>>, %arg4: memref<8x128xf32, #tpu.memory_space<vmem>>) attributes {dimension_semantics = [#tpu.dimension_semantics<parallel>], iteration_bounds = array<i64: 2>, scalar_prefetch = 0 : i64, scratch_operands = 0 : i64, tpu.core_type = #tpu.core_type<tc>, window_params = [{transform_indices = @transform_0, window_bounds = array<i64: 8, 1024>}, {pipeline_mode = #tpu.pipeline_mode<synchronous>, transform_indices = @transform_1, window_bounds = array<i64: 1024, 128>}, {pipeline_mode = #tpu.pipeline_mode<synchronous>, transform_indices = @transform_2, window_bounds = array<i64: 1, 128>}, {transform_indices = @transform_3, window_bounds = array<i64: 8, 128>}]} {
    %c0 = arith.constant 0 : index
    %c0_0 = arith.constant 0 : index
    %0 = vector.load %arg1[%c0, %c0_0] : memref<8x1024xbf16, #tpu.memory_space<vmem>>, vector<8x1024xbf16>
    %c0_1 = arith.constant 0 : index
    %c0_2 = arith.constant 0 : index
    %1 = vector.load %arg2[%c0_1, %c0_2] : memref<1024x128xbf16, #tpu.memory_space<vmem>>, vector<1024x128xbf16>
    %cst = arith.constant dense<0.000000e+00> : vector<8x128xf32>
    %2 = tpu.matmul %0, %1, %cst {dimension_numbers = #tpu.dot_dimension_numbers<[1], [0], [0], [1], [0, 0, 1, 1], [], []>} : vector<8x1024xbf16>, vector<1024x128xbf16>, vector<8x128xf32> -> vector<8x128xf32>
    %c0_3 = arith.constant 0 : index
    %c0_4 = arith.constant 0 : index
    %3 = vector.load %arg3[%c0_3, %c0_4] : memref<1x128xf32, #tpu.memory_space<vmem>>, vector<1x128xf32>
    %4 = vector.broadcast %3 : vector<1x128xf32> to vector<8x128xf32>
    %5 = arith.addf %2, %4 : vector<8x128xf32>
    %c0_5 = arith.constant 0 : index
    %c0_6 = arith.constant 0 : index
    %6 = vector.load %arg4[%c0_5, %c0_6] : memref<8x128xf32, #tpu.memory_space<vmem>>, vector<8x128xf32>
    tpu.vector_store %arg4[%c0_5, %c0_6], %5 {strides = array<i32>} : memref<8x128xf32, #tpu.memory_space<vmem>>, vector<8x128xf32>,
    return
  }
  func.func @transform_0(%arg0: i32) -> (i32, i32) {
    %c0_i32 = arith.constant 0 : i32
    %c0_i32_0 = arith.constant 0 : i32
    return %arg0, %c0_i32 : i32, i32
  }
  func.func @transform_1(%arg0: i32) -> (i32, i32) {
    %c0_i32 = arith.constant 0 : i32
    %c0_i32_0 = arith.constant 0 : i32
    %c0_i32_1 = arith.constant 0 : i32
    return %c0_i32, %c0_i32_0 : i32, i32
  }
  func.func @transform_2(%arg0: i32) -> (i32, i32) {
    %c0_i32 = arith.constant 0 : i32
    %c0_i32_0 = arith.constant 0 : i32
    %c0_i32_1 = arith.constant 0 : i32
    return %c0_i32, %c0_i32_0 : i32, i32
  }
  func.func @transform_3(%arg0: i32) -> (i32, i32) {
    %c0_i32 = arith.constant 0 : i32
    %c0_i32_0 = arith.constant 0 : i32
    return %arg0, %c0_i32 : i32, i32
  }
}

</mosaic_0001>

<bundles_post_ra>
// kernel: tpu_custom_call.1
= control target key start
LH: loop header
LB: loop body
LE: loop exit
PB: predicated region body
PF: predicated region fallthrough
CT: control target
= control target key end

     0   :  { %8 = vsyncpa [#allocation3], 0  ;;  %s1678_s0 = inlined_call_operand.hbm [shape: bf16[16,1024], index: 0, kind: input, shape index: {}]   ;;  %s1679_s1 = inlined_call_operand.hbm [shape: bf16[1024,128], index: 1, kind: input, shape index: {}]   ;;  %s1680_s2 = inlined_call_operand.vmem [shape: f32[1,128], index: 2, kind: input, shape index: {}]   ;;  %s1681_s3 = inlined_call_operand.hbm [shape: f32[16,128], index: 3, kind: output, shape index: {}]  }
   0x1   :  { %10 = vsyncpa [#allocation3 + $0x1], 0 }
   0x2   :  { %11 = vsyncpa [#allocation6], 0 }
   0x3   :  { %12 = vsyncpa [#allocation4], 0 }
   0x4   :  { %14 = vsyncpa [#allocation4 + $0x1], 0  ;;  %s1472_s12 = smov 0   ;;  %s1474_s13 = smov 0  }
   0x5   :  { %s1476_s14 = smov 0   ;;  %s1478_s15 = smov 0  }
   0x6 LB: > { %s1493_s16 = sadd.s32 4294967295, %s1445_s15   ;;  %s1009_s17 = sadd.s32 4294967294, %s1445_s15   ;;  %s1445_s15 = sphi %s1478_s15, %s1701_s15   ;;  %s1441_s14 = sphi %s1476_s14, %s1700_s14   ;;  %s1437_s13 = sphi %s1474_s13, %s1699_s13   ;;  %s1433_s12 = sphi %s1472_s12, %s1698_s12  }
   0x7   : > { %p40_p0 = scmp.ne.s32.totalorder %s1437_s13, %s1433_s12  ;;  %p1682_p1 = scmp.eq.s32.totalorder %s1493_s16, 0 }
   0x8   : > { %p112_p3 = scmp.eq.s32.totalorder %s1009_s17, 1  ;;  %p1010_p5 = scmp.ge.s32.totalorder %s1445_s15, 1 }
   0x9   : > { %p1502_p4 = por %p1682_p1, %p40_p0  ;;  %p119_p7 = scmp.lt.s32.totalorder %s1445_s15, 3 }
   0xa   : > { %p1507_p6 = por %p112_p3, %p40_p0  ;;  %s1447_s21 = smov [#allocation5]  }
   0xb   : > { %s1685_s18 = scalar_select %p1502_p4, 1, 0 }
   0xc   : > { %s1686_s19 = scalar_select %p1507_p6, 1, 0 }
   0xd   : > { %p1512_p8 = pnand %p1010_p5, %p119_p7  ;;  %s131_s22 = sshll.u32 %s1447_s21, 4  ;;  %s1516_s22 = int_to_ptr.vmem [resolvable:$true] %s131_s22 }
   0xe   : > { %s1528_s24 = sadd.s32 1, %s1445_s15   ;;  %s27_s25 = sadd.s32 1, %s1441_s14 }
   0xf   : > { %s1687_s20 = scalar_select %p1512_p8, 1, 0 }
  0x10   : > { %p1194_p9 = pneg %p1512_p8  ;;  %s24_s26 = ssub.s32 %s1445_s15, %s1528_s24 }
  0x11   : > { %s1317_s29 = scalar_lea.hbm %s1679_s1, 8192 }
  0x12   : > { %p1523_p11 = pnand %p1194_p9, %p1682_p1  ;;  %p1318_p12 = scmp.ne.s32.totalorder %s1679_s1, %s1317_s29 }
  0x13   : > { %p1324_p5 = scmp.lt.u32.totalorder %s1317_s29, %s1679_s1 }
  0x14   : > { %p1319_p13 = pneg %p1523_p11 }
  0x16   : > { %p1320_p0 = pnand %p1319_p13, %p1318_p12 }
  0x18   : > { %p1321_p3 = pneg %p1320_p0 }
  0x1a   : > { %p1326_p7 = pnand %p1324_p5, %p1321_p3 }
  0x1c   : > { %1329 = shalt.err (!%p1326_p7)
}
  0x1d   : > { %s1330_s7 = scalar_lea.vmem %s1516_s22, 8192  ;;  %p1338_p2 = scmp.lt.s32.totalorder %s1516_s22, %s1516_s22 }
  0x1e   : > { %p1331_p9 = scmp.ne.s32.totalorder %s1516_s22, %s1330_s7  ;;  %p1339_p6 = scmp.lt.s32.totalorder %s1330_s7, %s1330_s7 }
  0x20   : > { %p1333_p10 = pnand %p1331_p9, %p1319_p13  ;;  %p1340_p4 = por %p1339_p6, %p1338_p2 }
  0x22   : > { %p1334_p1 = pneg %p1333_p10 }
  0x24   : > { %p1341_p8 = pnand %p1340_p4, %p1334_p1 }
  0x26   : > { %1344 = shalt.err (!%p1341_p8)
}
  0x27   : > { %s1448_s8 = smov 64   ;;  %s1449_s9 = smov 4  }
  0x28   : > { %1197 = dma.hbm_to_vmem [thread:$0]  (!%p1523_p11), %s1679_s1, 8192, %s1516_s22, [#allocation6], %s1448_s8, %s1448_s8, %s1449_s9  }
  0x29   : > { %p25_p2 = scmp.eq.s32.totalorder %s24_s26, 0  ;;  %p34_p1 = scmp.ne.s32.totalorder %s1441_s14, %s1437_s13 }
  0x2a   : > { %p35_p4 = scmp.eq.s32.totalorder %s1445_s15, 0  ;;  %p1207_p6 = scmp.lt.s32.totalorder %s1445_s15, 2 }
  0x2b   : > { %s1559_s17 = scalar_select %p25_p2, %s1441_s14, %s27_s25  }
  0x2c   : > { %p36_p8 = por %p35_p4, %p34_p1  ;;  %p1689_p10 = scmp.eq.s32.totalorder %s1493_s16, 1 }
  0x2d   : > { %s148_s27 = sand.u32 1, %s1441_s14   ;;  %s1097_s28 = sshll.u32 %s1445_s15, 9 }
  0x2e   : > { %p1563_p12 = por %p1689_p10, %p34_p1  ;;  %s1013_s29 = sshll.u32 %s148_s27, 5 }
  0x2f   : > { %s1572_s4 = scalar_lea.hbm %s1678_s0, %s1097_s28  ;;  %s152_s22 = scalar_lea.vmem [#allocation2], %s1013_s29 }
  0x30   : > { %s160_s25 = sshll.u32 %s152_s22, 4  ;;  %p1574_p11 = pnand %p1207_p6, %p36_p8  ;;  %s1578_s25 = int_to_ptr.vmem [resolvable:$true] %s160_s25 }
  0x31   : > { %s149_s5 = scalar_lea.sflag [#allocation3], %s148_s27  ;;  %s1345_s6 = scalar_lea.hbm %s1572_s4, 512 }
  0x32   : > { %p1346_p13 = scmp.ne.s32.totalorder %s1572_s4, %s1345_s6  ;;  %p1347_p0 = pneg %p1574_p11 }
  0x33   : > { %s1350_s9 = scalar_lea.hbm %s1678_s0, 1024  ;;  %p1351_p7 = scmp.lt.u32.totalorder %s1572_s4, %s1678_s0 }
  0x34   : > { %p1348_p3 = pnand %p1347_p0, %p1346_p13  ;;  %p1352_p9 = scmp.lt.u32.totalorder %s1350_s9, %s1345_s6 }
  0x35   : > { %p1354_p1 = scmp.lt.u32.totalorder %s1345_s6, %s1572_s4 }
  0x36   : > { %p1349_p5 = pneg %p1348_p3  ;;  %p1353_p2 = por %p1352_p9, %p1351_p7 }
  0x38   : > { %p1355_p4 = por %p1354_p1, %p1353_p2 }
  0x3a   : > { %p1356_p6 = pnand %p1355_p4, %p1349_p5 }
  0x3c   : > { %1359 = shalt.err (!%p1356_p6)
}
  0x3d   : > { %s1360_s27 = scalar_lea.vmem %s1578_s25, 512  ;;  %s1450_s28 = smov [#allocation2]  }
  0x3e   : > { %p1361_p8 = scmp.ne.s32.totalorder %s1578_s25, %s1360_s27  ;;  %s1365_s29 = sshll.u32 %s1450_s28, 4  ;;  %s1366_s29 = int_to_ptr.vmem [resolvable:$false] %s1365_s29 }
  0x3f   : > { %s1367_s23 = scalar_lea.vmem %s1366_s29, 1024  ;;  %p1368_p3 = scmp.lt.s32.totalorder %s1578_s25, %s1366_s29 }
  0x40   : > { %p1363_p10 = pnand %p1361_p8, %p1347_p0  ;;  %p1369_p7 = scmp.lt.s32.totalorder %s1367_s23, %s1360_s27 }
  0x42   : > { %p1364_p13 = pneg %p1363_p10  ;;  %p1370_p9 = por %p1369_p7, %p1368_p3 }
  0x44   : > { %p1371_p2 = pnand %p1370_p9, %p1364_p13 }
  0x46   : > { %1374 = shalt.err (!%p1371_p2)
}
  0x47   : > { %1201 = dma.hbm_to_vmem [thread:$0]  (!%p1574_p11), %s1572_s4, 512, %s1578_s25, %s149_s5  }
  0x48   : > { %p1692_p5 = scmp.ne.s32.totalorder %s1687_s20, 0 }
  0x49   : > { %s1608_s30 = sand.u32 (!%p1692_p5), 1, %s1437_s13   ;;  %p1693_p0 = scmp.ne.s32.totalorder (!%p1692_p5), %s1685_s18, 0 }
  0x4a   : > { %169 = sbr.rel (%p1692_p5) target bundleno = 384 (0x180), region = 32  ;;  %s1017_s22 = sshll.u32 (!%p1692_p5), %s1608_s30, 5 }
  0x4b   : > { %s172_s6 = scalar_lea.sflag (!%p1692_p5), [#allocation3], %s1608_s30  ;;  %s1612_s7 = scalar_lea.vmem (!%p1692_p5), [#allocation2], %s1017_s22 }
  0x51   : > { %1420 = dma.done.wait (%p1693_p0), %s172_s6, 512  }
  0x52   : > { %1422 = vsyncadd (%p1693_p0), %s172_s6, 4294966784  ;;  %p1694_p11 = scmp.eq.s32.totalorder %s1493_s16, 0 }
  0x54   : > { %1424 = dma.done.wait (%p1694_p11), [#allocation6], 8192   ;;  %p1695_p1 = pmov %p1694_p11 }
  0x55   : > { %v1245_v0 = vld [vmem:[#allocation5 + $0x40] sm:$0xff]   ;;  %v1249_v4 = vld [vmem:[#allocation5 + $0x48] sm:$0xff]   ;;  %v1253_v8 = vld [vmem:[#allocation5 + $0x50] sm:$0xff]   ;;  %s1019_s4 = sshll.u32 %s1608_s30, 3  ;;  %s1094_s25 = sshll.u32 %s1493_s16, 7 }
  0x56   : > { %1426 = vsyncadd (%p1695_p1), [#allocation6], 4294959104  ;;  %v1246_v1 = vld [vmem:[#allocation5 + $0xc0] sm:$0xff]   ;;  %1098 = vmatprep.subr.bf16.mxu0 %v1245_v0  ;;  %v1250_v5 = vld [vmem:[#allocation5 + $0xc8] sm:$0xff]   ;;  %s201_s26 = scalar_lea.vmem [#allocation7], %s1019_s4  ;;  %s1634_s10 = scalar_lea.hbm %s1681_s3, %s1094_s25 }
  0x57   : > { %v1247_v2 = vld [vmem:[#allocation5] sm:$0xff]   ;;  %1120 = vmatprep.subr.bf16.mxu1 %v1246_v1  ;;  %v1251_v6 = vld [vmem:[#allocation5 + $0x8] sm:$0xff]   ;;  %v1254_v9 = vld [vmem:[#allocation5 + $0xd0] sm:$0xff]   ;;  %s929_s5 = sshll.u32 %s201_s26, 4  ;;  %s916_s11 = scalar_lea.sflag [#allocation4], %s1608_s30  ;;  %s1636_s5 = int_to_ptr.vmem [resolvable:$true] %s929_s5 }
  0x58   : > { %v1248_v3 = vld [vmem:[#allocation5 + $0x80] sm:$0xff]   ;;  %1099 = vmatpush3.bf16.msra.mxu0 %v1247_v2  ;;  %v1252_v7 = vld [vmem:[#allocation5 + $0x88] sm:$0xff]   ;;  %v1255_v10 = vld [vmem:[#allocation5 + $0x10] sm:$0xff]   ;;  %s1375_s27 = scalar_lea.vmem %s1636_s5, 128  ;;  %s1451_s16 = smov [#allocation7]  }
  0x59   : > { %1121 = vmatpush3.bf16.msra.mxu1 %v1248_v3  ;;  %1100 = vmatprep.subr.bf16.mxu0 %v1249_v4  ;;  %v1256_v11 = vld [vmem:[#allocation5 + $0x90] sm:$0xff]   ;;  %v1257_v12 = vld [vmem:[#allocation5 + $0x58] sm:$0xff]   ;;  %v1261_v16 = vld [vmem:[#allocation5 + $0x60] sm:$0xff]   ;;  %p1376_p4 = scmp.ne.s32.totalorder %s1636_s5, %s1375_s27  ;;  %s1379_s28 = sshll.u32 %s1451_s16, 4  ;;  %s1380_s28 = int_to_ptr.vmem [resolvable:$false] %s1379_s28 }
  0x5a   : > { %1122 = vmatprep.subr.bf16.mxu1 %v1250_v5  ;;  %v1258_v13 = vld [vmem:[#allocation5 + $0xd8] sm:$0xff]   ;;  %v1262_v17 = vld [vmem:[#allocation5 + $0xe0] sm:$0xff]   ;;  %v1265_v20 = vld [vmem:[#allocation5 + $0x68] sm:$0xff]   ;;  %s1381_s29 = scalar_lea.vmem %s1380_s28, 256  ;;  %p1382_p10 = scmp.lt.s32.totalorder %s1636_s5, %s1380_s28 }
  0x5b   : > { %v1259_v14 = vld [vmem:[#allocation5 + $0x18] sm:$0xff]   ;;  %v1263_v18 = vld [vmem:[#allocation5 + $0x20] sm:$0xff]   ;;  %v1266_v21 = vld [vmem:[#allocation5 + $0xe8] sm:$0xff]   ;;  %p1377_p6 = pnand %p1376_p4, %p1563_p12  ;;  %p1383_p13 = scmp.lt.s32.totalorder %s1381_s29, %s1375_s27 }
  0x5c   : > { %1101 = vmatpush3.bf16.msra.mxu0 %v1251_v6  ;;  %v1260_v15 = vld [vmem:[#allocation5 + $0x98] sm:$0xff]   ;;  %v1264_v19 = vld [vmem:[#allocation5 + $0xa0] sm:$0xff]   ;;  %v1267_v22 = vld [vmem:[#allocation5 + $0x28] sm:$0xff]  }
  0x5d   : > { %1123 = vmatpush3.bf16.msra.mxu1 %v1252_v7  ;;  %1102 = vmatprep.subr.bf16.mxu0 %v1253_v8  ;;  %v1268_v23 = vld [vmem:[#allocation5 + $0xa8] sm:$0xff]   ;;  %v1269_v24 = vld [vmem:[#allocation5 + $0x70] sm:$0xff]   ;;  %v1273_v28 = vld [vmem:[#allocation5 + $0x78] sm:$0xff]   ;;  %p1378_p8 = pneg %p1377_p6  ;;  %p1384_p3 = por %p1383_p13, %p1382_p10 }
  0x5e   : > { %1124 = vmatprep.subr.bf16.mxu1 %v1254_v9  ;;  %v1270_v25 = vld [vmem:[#allocation5 + $0xf0] sm:$0xff]   ;;  %v1274_v29 = vld [vmem:[#allocation5 + $0xf8] sm:$0xff]   ;;  %v203_v32 = vld [vmem:[%s1612_s7] sm:$0xff] }
  0x5f   : > { %v1271_v26 = vld [vmem:[#allocation5 + $0x30] sm:$0xff]   ;;  %v1275_v30 = vld [vmem:[#allocation5 + $0x38] sm:$0xff]   ;;  %v204_v33 = vld [vmem:[%s1612_s7 + $0x8] sm:$0xff]  ;;  %v1021_v34 = vcombine.low %v203_v32, %v203_v32  ;;  %v1022_v35 = vcombine.high %v203_v32, %v203_v32  ;;  %p1385_p7 = pnand %p1384_p3, %p1378_p8 }
  0x60   : > { %1103 = vmatpush3.bf16.msra.mxu0 %v1255_v10  ;;  %v1272_v27 = vld [vmem:[#allocation5 + $0xb0] sm:$0xff]   ;;  %v1276_v31 = vld [vmem:[#allocation5 + $0xb8] sm:$0xff]   ;;  %v1023_v36 = vcombine.low %v204_v33, %v204_v33  ;;  %v1024_v37 = vcombine.high %v204_v33, %v204_v33  ;;  %v1281_v38 = vld [vmem:[#allocation5 + $0x140] sm:$0xff]  }
  0x61   : > { %1125 = vmatpush3.bf16.msra.mxu1 %v1256_v11  ;;  %1104 = vmatprep.subr.bf16.mxu0 %v1257_v12  ;;  %v1282_v39 = vld [vmem:[#allocation5 + $0x1c0] sm:$0xff]   ;;  %v1285_v42 = vld [vmem:[#allocation5 + $0x148] sm:$0xff]   ;;  %v1289_v46 = vld [vmem:[#allocation5 + $0x150] sm:$0xff]  }
  0x62   : > { %1126 = vmatprep.subr.bf16.mxu1 %v1258_v13  ;;  %786 = vmatprep.mubr.bf16.mxu0 %v1022_v35  ;;  %v1283_v40 = vld [vmem:[#allocation5 + $0x100] sm:$0xff]   ;;  %v1286_v43 = vld [vmem:[#allocation5 + $0x1c8] sm:$0xff]   ;;  %v1290_v47 = vld [vmem:[#allocation5 + $0x1d0] sm:$0xff]  }
  0x63   : > { %826 = vmatprep.mubr.bf16.mxu1 %v1024_v37  ;;  %v1284_v41 = vld [vmem:[#allocation5 + $0x180] sm:$0xff]   ;;  %v1287_v44 = vld [vmem:[#allocation5 + $0x108] sm:$0xff]   ;;  %v1291_v48 = vld [vmem:[#allocation5 + $0x110] sm:$0xff]  }
  0x64   : > { %1105 = vmatpush3.bf16.msra.mxu0 %v1259_v14  ;;  %v1288_v45 = vld [vmem:[#allocation5 + $0x188] sm:$0xff]   ;;  %v1292_v49 = vld [vmem:[#allocation5 + $0x190] sm:$0xff]   ;;  %v1293_v50 = vld [vmem:[#allocation5 + $0x158] sm:$0xff]  }
  0x65   : > { %1127 = vmatpush3.bf16.msra.mxu1 %v1260_v15  ;;  %1106 = vmatprep.subr.bf16.mxu0 %v1261_v16  ;;  %v1294_v51 = vld [vmem:[#allocation5 + $0x1d8] sm:$0xff]   ;;  %v1297_v54 = vld [vmem:[#allocation5 + $0x160] sm:$0xff]   ;;  %v1301_v58 = vld [vmem:[#allocation5 + $0x168] sm:$0xff]  }
  0x66   : > { %1128 = vmatprep.subr.bf16.mxu1 %v1262_v17  ;;  %v1295_v52 = vld [vmem:[#allocation5 + $0x118] sm:$0xff]   ;;  %v1298_v55 = vld [vmem:[#allocation5 + $0x1e0] sm:$0xff]   ;;  %v1302_v59 = vld [vmem:[#allocation5 + $0x1e8] sm:$0xff]  }
  0x67   : > { %v1296_v53 = vld [vmem:[#allocation5 + $0x198] sm:$0xff]   ;;  %v1299_v56 = vld [vmem:[#allocation5 + $0x120] sm:$0xff]   ;;  %v1303_v60 = vld [vmem:[#allocation5 + $0x128] sm:$0xff]  }
  0x68   : > { %1107 = vmatpush3.bf16.msra.mxu0 %v1263_v18  ;;  %v1300_v57 = vld [vmem:[#allocation5 + $0x1a0] sm:$0xff]   ;;  %v1304_v61 = vld [vmem:[#allocation5 + $0x1a8] sm:$0xff]   ;;  %v1305_v62 = vld [vmem:[#allocation5 + $0x170] sm:$0xff]  }
  0x69   : > { %1129 = vmatpush3.bf16.msra.mxu1 %v1264_v19  ;;  %1108 = vmatprep.subr.bf16.mxu0 %v1265_v20  ;;  %v1306_v63 = vld [vmem:[#allocation5 + $0x1f0] sm:$0xff]   ;;  %v1309_v2 = vld [vmem:[#allocation5 + $0x178] sm:$0xff]   ;;  %v1020_v14 = vld [vmem:[%s1680_s2] ss:$0 sm:$0xff] }
  0x6a   : > { %1130 = vmatprep.subr.bf16.mxu1 %v1266_v21  ;;  %v1307_v0 = vld [vmem:[#allocation5 + $0x130] sm:$0xff]   ;;  %v1310_v3 = vld [vmem:[#allocation5 + $0x1f8] sm:$0xff]  }
  0x6b   : > { %v1308_v1 = vld [vmem:[#allocation5 + $0x1b0] sm:$0xff]   ;;  %v1311_v4 = vld [vmem:[#allocation5 + $0x138] sm:$0xff]  }
  0x6c   : > { %1109 = vmatpush3.bf16.msra.mxu0 %v1267_v22  ;;  %v1312_v5 = vld [vmem:[#allocation5 + $0x1b8] sm:$0xff]   ;;  %v205_v6 = vld [vmem:[%s1612_s7 + $0x10] sm:$0xff] }
  0x6d   : > { %1131 = vmatpush3.bf16.msra.mxu1 %v1268_v23  ;;  %1110 = vmatprep.subr.bf16.mxu0 %v1269_v24  ;;  %v1025_v7 = vcombine.low %v205_v6, %v205_v6  ;;  %v1026_v8 = vcombine.high %v205_v6, %v205_v6  ;;  %v206_v9 = vld [vmem:[%s1612_s7 + $0x18] sm:$0xff] }
  0x6e   : > { %1132 = vmatprep.subr.bf16.mxu1 %v1270_v25  ;;  %v1027_v10 = vcombine.low %v206_v9, %v206_v9  ;;  %v1028_v11 = vcombine.high %v206_v9, %v206_v9 }
  0x70   : > { %1111 = vmatpush3.bf16.msra.mxu0 %v1271_v26 }
  0x71   : > { %1133 = vmatpush3.bf16.msra.mxu1 %v1272_v27  ;;  %1112 = vmatprep.subr.bf16.mxu0 %v1273_v28 }
  0x72   : > { %1134 = vmatprep.subr.bf16.mxu1 %v1274_v29 }
  0x74   : > { %1113 = vmatpush3.bf16.msra.mxu0 %v1275_v30 }
  0x75   : > { %1135 = vmatpush3.bf16.msra.mxu1 %v1276_v31  ;;  %1142 = vmatprep.subr.bf16.mxu0 %v1281_v38 }
  0x76   : > { %1164 = vmatprep.subr.bf16.mxu1 %v1282_v39 }
  0x77   : > { %787 = vmatmul.mubr.bf16.vlgmr.msra.gmra.mrb[0].mxu0 %v1021_v34 }
  0x78   : > { %827 = vmatmul.mubr.bf16.vlgmr.msra.gmra.mrb[0].mxu1 %v1023_v36  ;;  %1143 = vmatpush3.bf16.msra.mxu0 %v1283_v40 }
  0x79   : > { %1165 = vmatpush3.bf16.msra.mxu1 %v1284_v41  ;;  %1144 = vmatprep.subr.bf16.mxu0 %v1285_v42 }
  0x7a   : > { %1166 = vmatprep.subr.bf16.mxu1 %v1286_v43  ;;  %866 = vmatprep.mubr.bf16.mxu0 %v1026_v8 }
  0x7b   : > { %906 = vmatprep.mubr.bf16.mxu1 %v1028_v11 }
  0x7c   : > { %1145 = vmatpush3.bf16.msra.mxu0 %v1287_v44 }
  0x7d   : > { %1167 = vmatpush3.bf16.msra.mxu1 %v1288_v45  ;;  %1146 = vmatprep.subr.bf16.mxu0 %v1289_v46 }
  0x7e   : > { %1168 = vmatprep.subr.bf16.mxu1 %v1290_v47 }
  0x80   : > { %1147 = vmatpush3.bf16.msra.mxu0 %v1291_v48 }
  0x81   : > { %1169 = vmatpush3.bf16.msra.mxu1 %v1292_v49  ;;  %1148 = vmatprep.subr.bf16.mxu0 %v1293_v50 }
  0x82   : > { %1170 = vmatprep.subr.bf16.mxu1 %v1294_v51 }
  0x84   : > { %1149 = vmatpush3.bf16.msra.mxu0 %v1295_v52 }
  0x85   : > { %1171 = vmatpush3.bf16.msra.mxu1 %v1296_v53  ;;  %1150 = vmatprep.subr.bf16.mxu0 %v1297_v54 }
  0x86   : > { %1172 = vmatprep.subr.bf16.mxu1 %v1298_v55 }
  0x88   : > { %1151 = vmatpush3.bf16.msra.mxu0 %v1299_v56 }
  0x89   : > { %1173 = vmatpush3.bf16.msra.mxu1 %v1300_v57  ;;  %1152 = vmatprep.subr.bf16.mxu0 %v1301_v58 }
  0x8a   : > { %1174 = vmatprep.subr.bf16.mxu1 %v1302_v59 }
  0x8c   : > { %1153 = vmatpush3.bf16.msra.mxu0 %v1303_v60 }
  0x8d   : > { %1175 = vmatpush3.bf16.msra.mxu1 %v1304_v61  ;;  %1154 = vmatprep.subr.bf16.mxu0 %v1305_v62 }
  0x8e   : > { %1176 = vmatprep.subr.bf16.mxu1 %v1306_v63 }
  0x90   : > { %1155 = vmatpush3.bf16.msra.mxu0 %v1307_v0 }
  0x91   : > { %1177 = vmatpush3.bf16.msra.mxu1 %v1308_v1  ;;  %1156 = vmatprep.subr.bf16.mxu0 %v1309_v2 }
  0x92   : > { %1178 = vmatprep.subr.bf16.mxu1 %v1310_v3 }
  0x94   : > { %1157 = vmatpush3.bf16.msra.mxu0 %v1311_v4 }
  0x95   : > { %1179 = vmatpush3.bf16.msra.mxu1 %v1312_v5 }
  0x97   : > { %867 = vmatmul.mubr.bf16.vlgmr.msra.gmra.mrb[4].mxu0 %v1025_v7 }
  0x98   : > { %907 = vmatmul.mubr.bf16.vlgmr.msra.gmra.mrb[4].mxu1 %v1027_v10 }
 0x14a   : > { %v1114_v12 = vpop.f32.mrb[0].mxu0 }
 0x14b   : > { %v1136_v13 = vpop.f32.mrb[0].mxu1  ;;  %v1115_v15 = vpop.f32.mrb[1].mxu0 }
 0x14c   : > { %v1137_v16 = vpop.f32.mrb[1].mxu1  ;;  %v1116_v17 = vadd.f32 %v1115_v15, %v1114_v12  ;;  %v1117_v19 = vpop.f32.mrb[2].mxu0 }
 0x14d   : > { %v1138_v18 = vadd.f32 %v1137_v16, %v1136_v13  ;;  %v1139_v20 = vpop.f32.mrb[2].mxu1  ;;  %v1118_v21 = vpop.f32.mrb[3].mxu0 }
 0x14e   : > { %v1140_v22 = vpop.f32.mrb[3].mxu1  ;;  %v789_v23 = vadd.f32 %v1116_v17, %v1020_v14 }
 0x150   : > { %v829_v24 = vadd.f32 %v1138_v18, %v789_v23 }
 0x16a   : > { %v1158_v25 = vpop.f32.mrb[4].mxu0 }
 0x16b   : > { %v1180_v26 = vpop.f32.mrb[4].mxu1  ;;  %v1159_v27 = vpop.f32.mrb[5].mxu0 }
 0x16c   : > { %v1181_v28 = vpop.f32.mrb[5].mxu1  ;;  %v1160_v29 = vadd.f32 %v1159_v27, %v1158_v25  ;;  %v1161_v31 = vpop.f32.mrb[6].mxu0 }
 0x16d   : > { %v1182_v30 = vadd.f32 %v1181_v28, %v1180_v26  ;;  %v1183_v32 = vpop.f32.mrb[6].mxu1  ;;  %v1162_v33 = vpop.f32.mrb[7].mxu0 }
 0x16e   : > { %v1184_v34 = vpop.f32.mrb[7].mxu1  ;;  %v869_v35 = vadd.f32 %v1160_v29, %v829_v24 }
 0x170   : > { %v909_v36 = vadd.f32 %v1182_v30, %v869_v35 }
 0x172   : > { %914 = vst [vmem:[%s201_s26] sm:$0xff] %v909_v36 }
 0x173   : > { %1388 = shalt.err (!%p1385_p7)
}
 0x174   : > { %s1389_s23 = scalar_lea.hbm %s1634_s10, 128  ;;  %s1393_s6 = scalar_lea.hbm %s1681_s3, 256 }
 0x175   : > { %p1390_p9 = scmp.ne.s32.totalorder %s1634_s10, %s1389_s23  ;;  %p1394_p0 = scmp.lt.u32.totalorder %s1634_s10, %s1681_s3 }
 0x176   : > { %p1395_p11 = scmp.lt.u32.totalorder %s1393_s6, %s1389_s23  ;;  %p1397_p4 = scmp.lt.u32.totalorder %s1389_s23, %s1634_s10 }
 0x177   : > { %p1391_p2 = pnand %p1390_p9, %p1563_p12 }
 0x178   : > { %p1396_p1 = por %p1395_p11, %p1394_p0 }
 0x179   : > { %p1392_p5 = pneg %p1391_p2 }
 0x17a   : > { %p1398_p6 = por %p1397_p4, %p1396_p1 }
 0x17c   : > { %p1399_p8 = pnand %p1398_p6, %p1392_p5 }
 0x17e   : > { %1402 = shalt.err (!%p1399_p8)
}
 0x17f   : > { %1192 = dma.vmem_to_hbm [thread:$0]  (%p1563_p12), %s1636_s5, 128, %s1634_s10, %s916_s11  }
 0x180 PF: > { %s941_s20 = sand.u32 1, %s1433_s12   ;;  %p1696_p10 = scmp.ne.s32.totalorder %s1686_s19, 0 }
 0x181   : > { %p1697_p13 = scmp.ge.s32.totalorder %s1445_s15, 2  ;;  %s942_s4 = scalar_lea.sflag [#allocation4], %s941_s20 }
 0x183   : > { %p1203_p3 = pnand %p1697_p13, %p1696_p10 }
 0x185   : > { %1428 = dma.done.wait (!%p1203_p3), %s942_s4, 128  }
 0x186   : > { %1430 = vsyncadd (!%p1203_p3), %s942_s4, 4294967168  ;;  %p17_p7 = scmp.ge.s32.totalorder %s1528_s24, 4   ;;  %s1698_s12 = smov %s1437_s13 }
 0x187   : > { %s1699_s13 = smov %s1441_s14  ;;  %s1700_s14 = smov %s1559_s17 }
 0x188   : > { %s1701_s15 = smov %s1528_s24  ;;  %19 = sbr.rel (!%p17_p7) target bundleno = 6 (0x6), region = 81 }
 0x18f   :  { %947 = vsyncpa [#allocation3], 1 }
 0x190   :  { %949 = vsyncpa [#allocation3 + $0x1], 1 }
 0x191   :  { %950 = vsyncpa [#allocation6], 1 }
 0x192   :  { %951 = vsyncpa [#allocation4], 1 }
 0x193   :  { %953 = vsyncpa [#allocation4 + $0x1], 1 }

</bundles_post_ra>
